<compile_context>
chip_gen: v7x
topology: tpu7x:2x2x1
jax: 0.10.0
libtpu: 0.0.40
codegen_flags: <defaults>
</compile_context>

<pallas_src>
import jax
import jax.numpy as jnp
from jax.experimental import pallas as pl
from jax.experimental.pallas import tpu as pltpu


# ----------------------------- Pallas kernels --------------------------------

def _fused_stage_kernel(rows_ref, wbb_ref, bbb_ref, wn_ref, bn_ref,
                        feat_ref, out_ref):
    """One scale, fully fused, whole problem in VMEM (grid=()).

    rows_ref: (K, M)  bf16   patchified input, transposed (lane dim = M)
    wbb_ref : (D, K)  bf16   backbone patch-embed weight (transposed)
    bbb_ref : (D, 1)  f32    backbone bias (column, lane-broadcast)
    wn_ref  : (C, D)  bf16   neck 1x1-conv weight (transposed)
    bn_ref  : (C, 1)  f32    neck bias
    feat_ref: (D, M)  bf16   backbone feature (input of the next stage)
    out_ref : (C, M)  f32    neck output (ReLU'd)
    """
    # Backbone patch-embed: bf16 x bf16 -> f32 accumulate on the MXU.
    feat = jnp.dot(wbb_ref[...], rows_ref[...],
                   preferred_element_type=jnp.float32) + bbb_ref[...]
    feat_bf = feat.astype(jnp.bfloat16)

    # Neck 1x1 conv + ReLU, intermediate stays in VMEM/vregs (never hits HBM).
    proj = jnp.dot(wn_ref[...], feat_bf,
                   preferred_element_type=jnp.float32) + bn_ref[...]

    feat_ref[...] = feat_bf
    out_ref[...] = jnp.maximum(proj, 0.0)


def _folded_linear_kernel(rows_ref, w_ref, b_ref, out_ref):
    """Last scale: backbone matmul and neck already folded into one matmul.

    rows_ref: (K, M) bf16, w_ref: (C, K) bf16, b_ref: (C, 1) f32, out: (C, M) f32.
    """
    acc = jnp.dot(w_ref[...], rows_ref[...],
                  preferred_element_type=jnp.float32) + b_ref[...]
    out_ref[...] = jnp.maximum(acc, 0.0)


def _vmem():
    # Whole-array block resident in VMEM (no grid, no pipelining needed here).
    return pl.BlockSpec(memory_space=pltpu.MemorySpace.VMEM)


def fused_backbone_neck(rows_T, wbb_T, b_bb, wn_T, b_n):
    d, _ = wbb_T.shape
    c_out, _ = wn_T.shape
    _, m = rows_T.shape
    return pl.pallas_call(
        _fused_stage_kernel,
        out_shape=(jax.ShapeDtypeStruct((d, m), jnp.bfloat16),
                   jax.ShapeDtypeStruct((c_out, m), jnp.float32)),
        in_specs=[_vmem()] * 5,
        out_specs=(_vmem(), _vmem()),
    )(rows_T, wbb_T, b_bb, wn_T, b_n)


def folded_linear(rows_T, w_T, b):
    c_out, _ = w_T.shape
    _, m = rows_T.shape
    return pl.pallas_call(
        _folded_linear_kernel,
        out_shape=jax.ShapeDtypeStruct((c_out, m), jnp.float32),
        in_specs=[_vmem()] * 3,
        out_specs=_vmem(),
    )(rows_T, w_T, b)


# --------------------------- Glue (plain JAX, jitted) -------------------------

def _patchify_T(t, p):
    """Non-overlapping p x p patchify of a channel-major (C, N, H, W) tensor.

    Returns (K, M) = (C*p*p, N*(H/p)*(W/p)), K order (c, py, px),
    M order (n, hp, wp), plus (n, hp, wp).
    """
    c, n, h, w = t.shape
    hp, wp = h // p, w // p
    t = t.reshape(c, n, hp, p, wp, p)
    t = jnp.transpose(t, (0, 3, 5, 1, 2, 4))        # (c, py, px, n, hp, wp)
    return t.reshape(c * p * p, n * hp * wp), (n, hp, wp)


class BackboneWrapperPallas:
    """Synthetic stand-in for BackboneWrapper(backbone, necks, channel_list)."""

    def __init__(self, in_channels, channel_list, patch=2, key=jax.random.PRNGKey(42)):
        self.channel_list = list(channel_list)
        self.out_channels = channel_list[-1]
        self.patch = patch
        self.num_stages = len(channel_list)
        self.backbone_dims = [16, 32][: self.num_stages]

        keys = jax.random.split(key, 4 * self.num_stages)
        w_bb_l, b_bb_l, w_n_l, b_n_l = [], [], [], []
        cin = in_channels
        ki = 0
        for dim, cout in zip(self.backbone_dims, self.channel_list):
            kdim = patch * patch * cin
            w_bb_l.append(0.02 * jax.random.normal(keys[ki], (kdim, dim), jnp.float32)); ki += 1
            b_bb_l.append(0.01 * jax.random.normal(keys[ki], (dim,), jnp.float32)); ki += 1
            w_n_l.append(0.02 * jax.random.normal(keys[ki], (dim, cout), jnp.float32)); ki += 1
            b_n_l.append(0.01 * jax.random.normal(keys[ki], (cout,), jnp.float32)); ki += 1
            cin = dim

        # Kernel-ready parameters: transposed (weight-stationary, lane dim = M),
        # bf16 matmul operands, f32 column biases.
        self.wbbT, self.bbb, self.wnT, self.bn = [], [], [], []
        for i in range(self.num_stages - 1):
            self.wbbT.append(w_bb_l[i].T.astype(jnp.bfloat16))
            self.bbb.append(b_bb_l[i].reshape(-1, 1))
            self.wnT.append(w_n_l[i].T.astype(jnp.bfloat16))
            self.bn.append(b_n_l[i].reshape(-1, 1))

        # Last scale: fold neck into the backbone matmul (no activation between).
        w_f = w_bb_l[-1] @ w_n_l[-1]                       # (K_last, C_last)
        b_f = b_bb_l[-1] @ w_n_l[-1] + b_n_l[-1]           # (C_last,)
        self.wfT = w_f.T.astype(jnp.bfloat16)              # (C_last, K_last)
        self.bf = b_f.reshape(-1, 1)

        self._forward = jax.jit(self._forward_impl)

    # Fused backbone(x) -> necks(feats) pipeline (semantics of BackboneWrapper.forward).
    def _forward_impl(self, x):
        p = self.patch
        n = x.shape[0]
        # One channel-major conversion of the input; all later stages already
        # live in channel-major (C, N, H, W) form.
        cur = jnp.transpose(x, (1, 0, 2, 3)).astype(jnp.bfloat16)
        outs = {}
        for i in range(self.num_stages):
            rows_T, (_, hp, wp) = _patchify_T(cur, p)
            if i < self.num_stages - 1:
                feat_T, out_T = fused_backbone_neck(
                    rows_T, self.wbbT[i], self.bbb[i], self.wnT[i], self.bn[i])
                # Next stage's input: (D_i, N, hp, wp), channel-major.
                cur = feat_T.reshape(self.backbone_dims[i], n, hp, wp)
            else:
                out_T = folded_linear(rows_T, self.wfT, self.bf)
            # (C, N*hp*wp) -> NCHW, one transpose per scale (unavoidable for the
            # PyTorch NCHW output convention), fused by XLA under the jit.
            outs[str(i)] = jnp.transpose(
                out_T.reshape(self.channel_list[i], n, hp, wp), (1, 0, 2, 3))
        return outs

    def forward(self, x, **kwargs):
        # kwargs accepted for API parity with BackboneWrapper; the synthetic
        # backbone takes no extra arguments, so they are ignored.
        del kwargs
        return self._forward(x)

    __call__ = forward


# --------------------------------- main --------------------------------------

if __name__ == "__main__":
    key = jax.random.PRNGKey(0)
    # Small shapes consistent with an NCHW detection backbone input.
    x = jax.random.normal(key, (2, 4, 16, 16), jnp.float32)   # (N, C, H, W)

    model = BackboneWrapperPallas(in_channels=4, channel_list=[16, 32], patch=2)
    out = model(x)

    for k in sorted(out):
        jax.block_until_ready(out[k])

    # Sanity: scale "0" is stride-2 (2,16,8,8); scale "1" is stride-4 (2,32,4,4)
    assert out["0"].shape == (2, 16, 8, 8), out["0"].shape
    assert out["1"].shape == (2, 32, 4, 4), out["1"].shape
    assert model.out_channels == 32

    print("KERNEL_OK")
</pallas_src>

<mosaic_0001>
module attributes {stable_mosaic.version = 11 : i64} {
  func.func @_fused_stage_kernel(%arg0: memref<16x128xbf16, #tpu.memory_space<vmem>>, %arg1: memref<16x16xbf16, #tpu.memory_space<vmem>>, %arg2: memref<16x1xf32, #tpu.memory_space<vmem>>, %arg3: memref<16x16xbf16, #tpu.memory_space<vmem>>, %arg4: memref<16x1xf32, #tpu.memory_space<vmem>>, %arg5: memref<16x128xbf16, #tpu.memory_space<vmem>>, %arg6: memref<16x128xf32, #tpu.memory_space<vmem>>) attributes {dimension_semantics = [], scalar_prefetch = 0 : i64, scratch_operands = 0 : i64, tpu.core_type = #tpu.core_type<tc>} {
    %c0 = arith.constant 0 : index
    %c0_0 = arith.constant 0 : index
    %0 = vector.load %arg1[%c0, %c0_0] : memref<16x16xbf16, #tpu.memory_space<vmem>>, vector<16x16xbf16>
    %c0_1 = arith.constant 0 : index
    %c0_2 = arith.constant 0 : index
    %1 = vector.load %arg0[%c0_1, %c0_2] : memref<16x128xbf16, #tpu.memory_space<vmem>>, vector<16x128xbf16>
    %cst = arith.constant dense<0.000000e+00> : vector<16x128xf32>
    %2 = tpu.matmul %0, %1, %cst {dimension_numbers = #tpu.dot_dimension_numbers<[1], [0], [0], [1], [0, 0, 1, 1], [], []>} : vector<16x16xbf16>, vector<16x128xbf16>, vector<16x128xf32> -> vector<16x128xf32>
    %c0_3 = arith.constant 0 : index
    %c0_4 = arith.constant 0 : index
    %3 = vector.load %arg2[%c0_3, %c0_4] : memref<16x1xf32, #tpu.memory_space<vmem>>, vector<16x1xf32>
    %4 = vector.broadcast %3 : vector<16x1xf32> to vector<16x128xf32>
    %5 = arith.addf %2, %4 : vector<16x128xf32>
    %6 = arith.truncf %5 : vector<16x128xf32> to vector<16x128xbf16>
    %c0_5 = arith.constant 0 : index
    %c0_6 = arith.constant 0 : index
    %7 = vector.load %arg3[%c0_5, %c0_6] : memref<16x16xbf16, #tpu.memory_space<vmem>>, vector<16x16xbf16>
    %cst_7 = arith.constant dense<0.000000e+00> : vector<16x128xf32>
    %8 = tpu.matmul %7, %6, %cst_7 {dimension_numbers = #tpu.dot_dimension_numbers<[1], [0], [0], [1], [0, 0, 1, 1], [], []>} : vector<16x16xbf16>, vector<16x128xbf16>, vector<16x128xf32> -> vector<16x128xf32>
    %c0_8 = arith.constant 0 : index
    %c0_9 = arith.constant 0 : index
    %9 = vector.load %arg4[%c0_8, %c0_9] : memref<16x1xf32, #tpu.memory_space<vmem>>, vector<16x1xf32>
    %10 = vector.broadcast %9 : vector<16x1xf32> to vector<16x128xf32>
    %11 = arith.addf %8, %10 : vector<16x128xf32>
    %c0_10 = arith.constant 0 : index
    %c0_11 = arith.constant 0 : index
    %12 = vector.load %arg5[%c0_10, %c0_11] : memref<16x128xbf16, #tpu.memory_space<vmem>>, vector<16x128xbf16>
    tpu.vector_store %arg5[%c0_10, %c0_11], %6 {strides = array<i32>} : memref<16x128xbf16, #tpu.memory_space<vmem>>, vector<16x128xbf16>,
    %cst_12 = arith.constant 0.000000e+00 : f32
    %13 = vector.broadcast %cst_12 : f32 to vector<16x128xf32>
    %14 = arith.maximumf %11, %13 : vector<16x128xf32>
    %c0_13 = arith.constant 0 : index
    %c0_14 = arith.constant 0 : index
    %15 = vector.load %arg6[%c0_13, %c0_14] : memref<16x128xf32, #tpu.memory_space<vmem>>, vector<16x128xf32>
    tpu.vector_store %arg6[%c0_13, %c0_14], %14 {strides = array<i32>} : memref<16x128xf32, #tpu.memory_space<vmem>>, vector<16x128xf32>,
    return
  }
}

module attributes {stable_mosaic.version = 11 : i64} {
  func.func @_folded_linear_kernel(%arg0: memref<64x32xbf16, #tpu.memory_space<vmem>>, %arg1: memref<32x64xbf16, #tpu.memory_space<vmem>>, %arg2: memref<32x1xf32, #tpu.memory_space<vmem>>, %arg3: memref<32x32xf32, #tpu.memory_space<vmem>>) attributes {dimension_semantics = [], scalar_prefetch = 0 : i64, scratch_operands = 0 : i64, tpu.core_type = #tpu.core_type<tc>} {
    %c0 = arith.constant 0 : index
    %c0_0 = arith.constant 0 : index
    %0 = vector.load %arg1[%c0, %c0_0] : memref<32x64xbf16, #tpu.memory_space<vmem>>, vector<32x64xbf16>
    %c0_1 = arith.constant 0 : index
    %c0_2 = arith.constant 0 : index
    %1 = vector.load %arg0[%c0_1, %c0_2] : memref<64x32xbf16, #tpu.memory_space<vmem>>, vector<64x32xbf16>
    %cst = arith.constant dense<0.000000e+00> : vector<32x32xf32>
    %2 = tpu.matmul %0, %1, %cst {dimension_numbers = #tpu.dot_dimension_numbers<[1], [0], [0], [1], [0, 0, 1, 1], [], []>} : vector<32x64xbf16>, vector<64x32xbf16>, vector<32x32xf32> -> vector<32x32xf32>
    %c0_3 = arith.constant 0 : index
    %c0_4 = arith.constant 0 : index
    %3 = vector.load %arg2[%c0_3, %c0_4] : memref<32x1xf32, #tpu.memory_space<vmem>>, vector<32x1xf32>
    %4 = vector.broadcast %3 : vector<32x1xf32> to vector<32x32xf32>
    %5 = arith.addf %2, %4 : vector<32x32xf32>
    %cst_5 = arith.constant 0.000000e+00 : f32
    %6 = vector.broadcast %cst_5 : f32 to vector<32x32xf32>
    %7 = arith.maximumf %5, %6 : vector<32x32xf32>
    %c0_6 = arith.constant 0 : index
    %c0_7 = arith.constant 0 : index
    %8 = vector.load %arg3[%c0_6, %c0_7] : memref<32x32xf32, #tpu.memory_space<vmem>>, vector<32x32xf32>
    tpu.vector_store %arg3[%c0_6, %c0_7], %7 {strides = array<i32>} : memref<32x32xf32, #tpu.memory_space<vmem>>, vector<32x32xf32>,
    return
  }
}

</mosaic_0001>

<bundles_post_ra>
// kernel: _forward_impl.3
= control target key start
LH: loop header
LB: loop body
LE: loop exit
PB: predicated region body
PF: predicated region fallthrough
CT: control target
= control target key end

     0   :  { %v189_v1 = vmov 0   ;;  %vm85_vm0 = vcmask 523264   ;;  %vm145_vm1 = vcmask 261120   ;;  %s254_s0 = inlined_call_operand.vmem [shape: bf16[64,32], index: 0, kind: input, shape index: {}]   ;;  %s255_s1 = inlined_call_operand.vmem [shape: bf16[32,64], index: 1, kind: input, shape index: {}]   ;;  %s256_s2 = inlined_call_operand.vmem [shape: f32[32,1], index: 2, kind: input, shape index: {}]   ;;  %s257_s3 = inlined_call_operand.vmem [shape: f32[32,32], index: 3, kind: output, shape index: {}]  }
   0x1   :  { %v183_v0 = vld [vmem:[%s254_s0] sm:$0xff]   ;;  %182 = vset.pattern.permute.xlu1 %v189_v1  ;;  %181 = vset.pattern.permute.xlu0 %v189_v1  ;;  %v184_v2 = vld [vmem:[%s254_s0 + $0x8] sm:$0xff]   ;;  %v185_v3 = vld [vmem:[%s254_s0 + $0x10] sm:$0xff]  }
   0x2   :  { %168 = vmatprep.subr.bf16.mxu0 %v183_v0  ;;  %v187_v4 = vld [vmem:[%s255_s1] sm:$0xff]   ;;  %v29_v5 = vld [vmem:[%s256_s2 + $0x10] sm:$0xff]  ;;  %v186_v7 = vld [vmem:[%s254_s0 + $0x18] sm:$0xff]  }
   0x3   :  { %169 = vmatpush3.bf16.msra.mxu0 %v183_v0  ;;  %176 = vmatprep.mubr.msk.bf16.mxu0 %vm85_vm0, %v187_v4  ;;  %v27_v6 = vld [vmem:[%s256_s2] sm:$0xff]  ;;  %v30_v8 = vld [vmem:[%s256_s2 + $0x18] sm:$0xff]  ;;  %v28_v9 = vld [vmem:[%s256_s2 + $0x8] sm:$0xff] }
   0x4   :  { %170 = vmatprep.subr.bf16.mxu0 %v184_v2  ;;  %43 = vperm.xlu1 %182, %v29_v5   ;;  %v188_v10 = vld [vmem:[%s255_s1 + $0x8] sm:$0xff]  }
   0x5   :  { %33 = vperm.xlu0 %181, %v27_v6  }
   0x7   :  { %171 = vmatpush3.bf16.msra.mxu0 %v184_v2 }
   0x8   :  { %172 = vmatprep.subr.bf16.mxu0 %v185_v3  ;;  %48 = vperm.xlu1 %182, %v30_v8  }
   0x9   :  { %38 = vperm.xlu0 %181, %v28_v9  }
   0xb   :  { %173 = vmatpush3.bf16.msra.mxu0 %v185_v3 }
   0xc   :  { %174 = vmatprep.subr.bf16.mxu0 %v186_v7 }
   0xf   :  { %175 = vmatpush3.bf16.msra.mxu0 %v186_v7 }
  0x12   :  { %177 = vmatmul.mubr.msk.bf16.vlgmr.msra.gmra.mrb[0].mxu0 %vm85_vm0, %v188_v10 }
  0x83   :  { %v44_v11 = vpop.permute.xlu1 %43 }
  0x84   :  { %v34_v12 = vpop.permute.xlu0 %33 }
  0x87   :  { %v49_v16 = vpop.permute.xlu1 %48 }
  0x88   :  { %v39_v19 = vpop.permute.xlu0 %38 }
  0xe5   :  { %v178_v13 = vpop.f32.mrb[0].mxu0 }
  0xe6   :  { %v135_v14 = vadd.f32 %v178_v13, %v44_v11  ;;  %v126_v15 = vpop.f32.mrb[1].mxu0 }
  0xe7   :  { %v127_v17 = vadd.f32 %v126_v15, %v34_v12  ;;  %v179_v18 = vpop.f32.mrb[2].mxu0 }
  0xe8   :  { %v143_v20 = vmax.f32 %v135_v14, 0.0  ;;  %v138_v21 = vadd.f32 %v179_v18, %v49_v16  ;;  %v129_v22 = vpop.f32.mrb[3].mxu0 }
  0xe9   :  { %v141_v23 = vmax.f32 %v127_v17, 0.0  ;;  %v130_v24 = vadd.f32 %v129_v22, %v39_v19 }
  0xea   :  { %148 = vst.msk [vmem:[%s257_s3 + $0x10] sm:$0xff] %vm145_vm1, %v143_v20  ;;  %v144_v25 = vmax.f32 %v138_v21, 0.0 }
  0xeb   :  { %146 = vst.msk [vmem:[%s257_s3] sm:$0xff] %vm145_vm1, %v141_v23  ;;  %v142_v26 = vmax.f32 %v130_v24, 0.0 }
  0xec   :  { %149 = vst.msk [vmem:[%s257_s3 + $0x18] sm:$0xff] %vm145_vm1, %v144_v25 }
  0xed   :  { %147 = vst.msk [vmem:[%s257_s3 + $0x8] sm:$0xff] %vm145_vm1, %v142_v26 }

// kernel: _forward_impl.2
= control target key start
LH: loop header
LB: loop body
LE: loop exit
PB: predicated region body
PF: predicated region fallthrough
CT: control target
= control target key end

     0   :  { %v218_v0 = vmov 0.0   ;;  %vm219_vm0 = vmmov 0   ;;  %v220_v3 = vmov 0   ;;  %vm50_vm1 = vcmask 130048   ;;  %s288_s0 = inlined_call_operand.vmem [shape: bf16[16,128], index: 0, kind: input, shape index: {}]   ;;  %s289_s1 = inlined_call_operand.vmem [shape: bf16[16,16], index: 1, kind: input, shape index: {}]   ;;  %s290_s2 = inlined_call_operand.vmem [shape: f32[16,1], index: 2, kind: input, shape index: {}]   ;;  %s291_s3 = inlined_call_operand.vmem [shape: bf16[16,16], index: 3, kind: input, shape index: {}]   ;;  %s292_s4 = inlined_call_operand.vmem [shape: f32[16,1], index: 4, kind: input, shape index: {}]   ;;  %s293_s5 = inlined_call_operand.vmem [shape: bf16[16,128], index: 5, kind: output, shape index: {0}]   ;;  %s294_s6 = inlined_call_operand.vmem [shape: f32[16,128], index: 6, kind: output, shape index: {1}]  }
   0x1   :  { %198 = vmatprep.subr.bf16.mxu0 %v218_v0  ;;  %v215_v1 = vld [vmem:[%s288_s0] sm:$0xff]   ;;  %200 = vmatprep.mubr.msk.bf16.mxu0 %vm219_vm0, %v218_v0  ;;  %v28_v5 = vld [vmem:[%s290_s2 + $0x8] sm:$0xff] }
   0x2   :  { %v216_v2 = vld [vmem:[%s289_s1] sm:$0xff]   ;;  %213 = vset.pattern.permute.xlu0 %v220_v3  ;;  %204 = vmatprep.subr.bf16.mxu1 %v218_v0  ;;  %v99_v7 = vld [vmem:[%s292_s4 + $0x8] sm:$0xff] }
   0x3   :  { %199 = vmatpush3.bf16.msra.mxu0 %v215_v1  ;;  %v27_v4 = vld [vmem:[%s290_s2] sm:$0xff]  ;;  %206 = vmatprep.mubr.msk.bf16.mxu1 %vm219_vm0, %v218_v0 }
   0x4   :  { %31 = vperm.xlu0 %213, %v27_v4   ;;  %214 = vset.pattern.permute.xlu1 %v220_v3  ;;  %v98_v6 = vld [vmem:[%s292_s4] sm:$0xff] }
   0x5   :  { %102 = vperm.xlu1 %214, %v98_v6   ;;  %v217_v17 = vld [vmem:[%s291_s3] sm:$0xff]  }
   0x6   :  { %201 = vmatmul.mubr.msk.bf16.vlgmr.msra.gmra.mrb[0].mxu0 %vm50_vm1, %v216_v2 }
   0x8   :  { %36 = vperm.xlu0 %213, %v28_v5  }
   0x9   :  { %107 = vperm.xlu1 %214, %v99_v7  }
  0x83   :  { %v32_v8 = vpop.permute.xlu0 %31 }
  0x84   :  { %v103_v18 = vpop.permute.xlu1 %102 }
  0x87   :  { %v37_v11 = vpop.permute.xlu0 %36 }
  0x88   :  { %v108_v22 = vpop.permute.xlu1 %107 }
  0xd9   :  { %v88_v9 = vpop.f32.mrb[0].mxu0 }
  0xda   :  { %v202_v10 = vpop.f32.mrb[1].mxu0  ;;  %v89_v13 = vadd.f32 %v88_v9, %v32_v8 }
  0xdb   :  { %v91_v12 = vpop.f32.mrb[2].mxu0 }
  0xdc   :  { %v92_v14 = vadd.f32 %v91_v12, %v37_v11  ;;  %v203_v15 = vpop.f32.mrb[3].mxu0 }
  0xde   :  { %v95_v16 = vpack.c.bf16 %v92_v14, %v89_v13 }
  0xe0   :  { %205 = vmatpush3.bf16.msra.mxu1 %v95_v16  ;;  %193 = vst [vmem:[%s293_s5] sm:$0xff] %v95_v16  }
  0xe3   :  { %207 = vmatmul.mubr.msk.bf16.vlgmr.msra.gmra.mrb[0].mxu1 %vm50_vm1, %v217_v17 }
 0x1b6   :  { %v152_v19 = vpop.f32.mrb[0].mxu1 }
 0x1b7   :  { %v153_v20 = vadd.f32 %v152_v19, %v103_v18  ;;  %v208_v21 = vpop.f32.mrb[1].mxu1 }
 0x1b8   :  { %v155_v23 = vpop.f32.mrb[2].mxu1 }
 0x1b9   :  { %v168_v24 = vmax.f32 %v153_v20, 0.0  ;;  %v156_v25 = vadd.f32 %v155_v23, %v108_v22  ;;  %v209_v26 = vpop.f32.mrb[3].mxu1 }
 0x1bb   :  { %170 = vst [vmem:[%s294_s6] sm:$0xff] %v168_v24  ;;  %v169_v27 = vmax.f32 %v156_v25, 0.0 }
 0x1bd   :  { %171 = vst [vmem:[%s294_s6 + $0x8] sm:$0xff] %v169_v27 }

</bundles_post_ra>
